<compile_context>
chip_gen: v6e
topology: v6e:2x2x1
jax: 0.10.0
libtpu: 0.0.40
codegen_flags: <defaults>
</compile_context>

<pallas_src>
import functools

import numpy as np
import jax
import jax.numpy as jnp
from jax import lax
from jax.experimental import pallas as pl
from jax.experimental.pallas import tpu as pltpu

H = 2                         # num_attention_heads_complex
ATOM_DIM = 4
L_DIM = 9
INPUT_DIM = ATOM_DIM + 6 * H  # 16  (embed_dim of the MHA)
KDIM = INPUT_DIM + L_DIM      # 25
VDIM = INPUT_DIM + L_DIM      # 25


# -----------------------------------------------------------------------------
# Pallas kernel: in-kernel feature prep (W_in matmul + sin/cos) + fused q/k/v
# projection + multi-head attention (mask built in-kernel) + output projection,
# for one chunk of CT = (B/num_chunks)*N flattened tokens.
# -----------------------------------------------------------------------------
def fused_attn_kernel(frac_ref, atoms_ref, L_ref, kbias_ref,
                      win_ref, wa_ref, ws_ref, wc_ref, wl_ref, bqkv_ref,
                      wo_ref, bo_ref, o_ref,
                      *, num_heads, embed_dim, tokens_per_batch):
    E, nH = embed_dim, num_heads
    d = E // nH
    CT = frac_ref.shape[0]
    N = tokens_per_batch
    batches_per_chunk = CT // N
    scale = 1.0 / float(np.sqrt(d))
    bf16 = lambda a: a.astype(jnp.bfloat16)
    f32 = jnp.float32

    # ---- feature prep (previously wrapper XLA ops) -------------------------------
    # frac @ (2π·[Wq_in^T | Wk_in^T | Wv_in^T]).  Phase-sensitive -> keep f32 (a bf16
    # rounding of a ~2π-scaled phase would shift sin/cos by percents).
    proj = jnp.dot(frac_ref[...], win_ref[...],
                   preferred_element_type=f32)                       # (CT, 3*3H)
    sin_all = jnp.sin(proj)                                          # EUP
    cos_all = jnp.cos(proj)

    # ---- fused q/k/v in-projection ------------------------------------------------
    # Wq_out/Wk_out/Wv_out and the MHA in-projection are folded into per-input-group
    # weights (atoms / sin / cos / L); the atoms x3 and L x2 duplication of the original
    # 66-wide feature vector lives in the weights, not in DMA'd activations.
    qkv = (jnp.dot(bf16(atoms_ref[...]), bf16(wa_ref[...]), preferred_element_type=f32)
           + jnp.dot(bf16(sin_all), bf16(ws_ref[...]), preferred_element_type=f32)
           + jnp.dot(bf16(cos_all), bf16(wc_ref[...]), preferred_element_type=f32)
           + jnp.dot(bf16(L_ref[...]), bf16(wl_ref[...]), preferred_element_type=f32)
           + bqkv_ref[...])                                          # (CT, 3E) f32
    q = qkv[:, 0:E]
    k = qkv[:, E:2 * E]
    v = qkv[:, 2 * E:3 * E]

    # ---- multi-head attention, heads stacked along sublanes -----------------------
    # Rows [h*CT,(h+1)*CT) of q_blk keep only head h's d lanes, so ONE matmul gives all
    # heads' scores stacked as (nH*CT, CT).  QK^T kept in f32 (scores feed exp()).
    lane = lax.broadcasted_iota(jnp.int32, (CT, E), 1)
    head_mask = [(lane >= h * d) & (lane < (h + 1) * d) for h in range(nH)]
    q_blk = jnp.concatenate([jnp.where(head_mask[h], q, 0.0) for h in range(nH)],
                            axis=0)                                  # (nH*CT, E)
    s = lax.dot_general(q_blk, k, (((1,), (1,)), ((), ())),
                        preferred_element_type=f32) * scale          # (nH*CT, CT)

    # ---- attention mask built in-kernel (no O(CT^2) bias DMA) ----------------------
    # Same-batch block-diagonal mask from iota compares (no int div/mod needed: batch
    # ids are sums of static threshold compares), identical for every head.
    if batches_per_chunk > 1:
        row = lax.broadcasted_iota(jnp.int32, (nH * CT, 1), 0)
        col = lax.broadcasted_iota(jnp.int32, (1, CT), 1)
        q_batch = jnp.zeros((nH * CT, 1), jnp.int32)
        for h in range(nH):
            for b in range(1, batches_per_chunk):
                q_batch = q_batch + ((row >= h * CT + b * N) &
                                     (row < (h + 1) * CT)).astype(jnp.int32)
        k_batch = jnp.zeros((1, CT), jnp.int32)
        for b in range(1, batches_per_chunk):
            k_batch = k_batch + (col >= b * N).astype(jnp.int32)
        s = jnp.where(q_batch == k_batch, s, -1e30)
    # Key-padding bias: (1, CT) broadcasts for free over the stacked scores.
    s = s + kbias_ref[...]

    # ---- softmax (f32 VPU/EUP) ------------------------------------------------------
    # Note: with a finite -1e30 bias a fully-masked query row gives UNIFORM attention,
    # not torch's NaN.  TODO(synk): mimic torch's NaN behavior if ever required.
    m = jnp.max(s, axis=-1, keepdims=True)
    p = jnp.exp(s - m)
    denom = jnp.sum(p, axis=-1, keepdims=True)
    inv = pl.reciprocal(denom, approx=True)        # EUP slot
    inv = inv * (2.0 - denom * inv)                # one Newton step -> ~exact f32
    p = p * inv

    # ---- PV: one matmul against full V; head h's useful lanes already sit at their
    #      concat position, so heads recombine with masked adds. ----------------------
    t = jnp.dot(bf16(p), bf16(v), preferred_element_type=f32)        # (nH*CT, E)
    o = jnp.where(head_mask[0], t[0:CT, :], 0.0)
    for h in range(1, nH):
        o = o + jnp.where(head_mask[h], t[h * CT:(h + 1) * CT, :], 0.0)

    # ---- output projection ----------------------------------------------------------
    o_ref[...] = jnp.dot(bf16(o), bf16(wo_ref[...]),
                         preferred_element_type=f32) + bo_ref[...]


def fused_mha_pallas(frac, atoms, L, kbias, fp, *, num_heads, num_chunks,
                     tokens_per_batch):
    BN = frac.shape[0]
    E = fp['w_o'].shape[0]
    CT = BN // num_chunks

    data = lambda c: (c, 0)        # chunked token inputs / output
    rep = lambda c: (0, 0)         # weights replicated -> stay VMEM-resident
    grid_spec = pltpu.PrefetchScalarGridSpec(
        num_scalar_prefetch=0,
        grid=(num_chunks,),
        in_specs=[
            pl.BlockSpec((CT, frac.shape[1]), data),          # frac_coords  (CT, 3)
            pl.BlockSpec((CT, atoms.shape[1]), data),         # atoms        (CT, 4)
            pl.BlockSpec((CT, L.shape[1]), data),             # L            (CT, 9)
            pl.BlockSpec((None, 1, CT), lambda c: (c, 0, 0)),  # key-pad bias (1, CT)
            pl.BlockSpec(fp['win'].shape, rep),               # 2π-scaled fused W_in
            pl.BlockSpec(fp['w_atoms'].shape, rep),           # atoms -> [Q|K|V]
            pl.BlockSpec(fp['w_sin'].shape, rep),             # sin   -> [Q|K|V] (blockdiag)
            pl.BlockSpec(fp['w_cos'].shape, rep),             # cos   -> [Q|K|V] (blockdiag)
            pl.BlockSpec(fp['w_L'].shape, rep),               # L     -> [.|K|V]
            pl.BlockSpec(fp['b_qkv'].shape, rep),             # fused in-proj bias
            pl.BlockSpec(fp['w_o'].shape, rep),               # out-proj W^T
            pl.BlockSpec(fp['b_o'].shape, rep),               # out-proj bias
        ],
        out_specs=pl.BlockSpec((CT, E), data),
    )
    kernel = functools.partial(fused_attn_kernel, num_heads=num_heads, embed_dim=E,
                               tokens_per_batch=tokens_per_batch)
    return pl.pallas_call(
        kernel,
        out_shape=jax.ShapeDtypeStruct((BN, E), jnp.float32),
        grid_spec=grid_spec,
        compiler_params=pltpu.CompilerParams(
            # Single grid step on v5e/v6e (num_chunks=1).  With num_chunks>1 the chunk
            # axis is marked parallel; TODO(synk): verify v7x 2-TC sharding (CORE_PARALLEL).
            dimension_semantics=("arbitrary",) if num_chunks == 1 else ("parallel",)),
    )(frac, atoms, L, kbias,
      fp['win'], fp['w_atoms'], fp['w_sin'], fp['w_cos'], fp['w_L'], fp['b_qkv'],
      fp['w_o'], fp['b_o'])


# -----------------------------------------------------------------------------
# Parameter folding (done once, outside the hot path):
#   * Wq_out/Wk_out/Wv_out are folded into the MHA in-projection:
#       (x @ W1^T + b1) @ W2^T + b2 == x @ (W1^T W2^T) + (b1 @ W2^T + b2)
#   * the sin/cos interleaving and the atoms x3 / L x2 duplication of the original
#     feature concat are folded into per-input-group weights (atoms / sin / cos / L),
#   * 2π is folded into the fused W_in so the kernel does sin(proj)/cos(proj) directly.
# -----------------------------------------------------------------------------
def fold_params(raw):
    E = raw['q_proj_w'].shape[0]              # 16
    KD = raw['k_proj_w'].shape[1]             # 25
    nsc = E - ATOM_DIM                        # 12 interleaved sin/cos features (6H)
    npair = nsc // 2                          # 6 = 3H
    ldim = KD - E                             # 9

    wq_eff = raw['Wq_out_w'].T @ raw['q_proj_w'].T                  # (E, E)
    wk_eff = raw['Wk_out_w'].T @ raw['k_proj_w'].T                  # (KD, E)
    wv_eff = raw['Wv_out_w'].T @ raw['v_proj_w'].T                  # (VD, E)
    bq_eff = raw['Wq_out_b'] @ raw['q_proj_w'].T + raw['bq']
    bk_eff = raw['Wk_out_b'] @ raw['k_proj_w'].T + raw['bk']
    bv_eff = raw['Wv_out_b'] @ raw['v_proj_w'].T + raw['bv']

    # fused, 2π-scaled W_in: frac (.,3) @ win -> [proj_q | proj_k | proj_v]
    win = (2.0 * np.pi) * jnp.concatenate(
        [raw['Wq_in'].T, raw['Wk_in'].T, raw['Wv_in'].T], axis=1)    # (3, 3*npair)

    # de-interleave sin/cos rows of the effective in-projection weights
    sl_sin = slice(ATOM_DIM, ATOM_DIM + nsc, 2)
    sl_cos = slice(ATOM_DIM + 1, ATOM_DIM + nsc, 2)
    z = jnp.zeros((npair, E), jnp.float32)

    w_atoms = jnp.concatenate([wq_eff[:ATOM_DIM], wk_eff[:ATOM_DIM],
                               wv_eff[:ATOM_DIM]], axis=1)           # (4, 3E)
    w_sin = jnp.block([[wq_eff[sl_sin], z, z],
                       [z, wk_eff[sl_sin], z],
                       [z, z, wv_eff[sl_sin]]])                      # (3*npair, 3E)
    w_cos = jnp.block([[wq_eff[sl_cos], z, z],
                       [z, wk_eff[sl_cos], z],
                       [z, z, wv_eff[sl_cos]]])                      # (3*npair, 3E)
    w_L = jnp.concatenate([jnp.zeros((ldim, E), jnp.float32),
                           wk_eff[ATOM_DIM + nsc:],
                           wv_eff[ATOM_DIM + nsc:]], axis=1)         # (ldim, 3E)
    b_qkv = jnp.concatenate([bq_eff, bk_eff, bv_eff])[None, :]       # (1, 3E)

    return dict(win=win, w_atoms=w_atoms, w_sin=w_sin, w_cos=w_cos, w_L=w_L,
                b_qkv=b_qkv, w_o=raw['out_w'].T, b_o=raw['out_b'][None, :])


# -----------------------------------------------------------------------------
# Wrapper: reshapes + one `where` — everything else happens inside the kernel.
# -----------------------------------------------------------------------------
def attention_sincos_forward_pallas(fp, frac_coords, atoms, L, mask,
                                    *, num_heads, num_chunks=1):
    B, N, _ = frac_coords.shape
    BN = B * N
    assert B % num_chunks == 0
    CT = BN // num_chunks
    assert CT % 8 == 0, "tokens per chunk must be a multiple of 8"  # TODO(synk): pad

    frac_flat = frac_coords.reshape(BN, -1)
    atoms_flat = atoms.reshape(BN, -1)
    L_flat = L.reshape(BN, -1)
    # (num_chunks, 1, CT) additive key-padding bias; the block-diag cross-batch mask is
    # rebuilt inside the kernel (no O(CT^2) bias in HBM).
    kbias = jnp.where(mask, -1e30, 0.0).astype(jnp.float32).reshape(num_chunks, 1, CT)

    out_flat = fused_mha_pallas(frac_flat, atoms_flat, L_flat, kbias, fp,
                                num_heads=num_heads, num_chunks=num_chunks,
                                tokens_per_batch=N)
    return out_flat.reshape(B, N, -1)


# -----------------------------------------------------------------------------
# Pure-JAX reference (direct port of the PyTorch forward, no folding/fusion).
# -----------------------------------------------------------------------------
def periodic_w_ref(x):
    s = jnp.sin(2.0 * np.pi * x)
    c = jnp.cos(2.0 * np.pi * x)
    return jnp.stack([s, c], axis=-1).reshape(x.shape[0], x.shape[1], 2 * x.shape[2])


def attention_sincos_forward_ref(raw, frac_coords, atoms, L, mask, *, num_heads):
    qp = periodic_w_ref(frac_coords @ raw['Wq_in'].T)
    kp = periodic_w_ref(frac_coords @ raw['Wk_in'].T)
    vp = periodic_w_ref(frac_coords @ raw['Wv_in'].T)
    q = jnp.concatenate([atoms, qp], axis=-1) @ raw['Wq_out_w'].T + raw['Wq_out_b']
    k = jnp.concatenate([atoms, kp, L], axis=-1) @ raw['Wk_out_w'].T + raw['Wk_out_b']
    v = jnp.concatenate([atoms, vp, L], axis=-1) @ raw['Wv_out_w'].T + raw['Wv_out_b']

    Q = q @ raw['q_proj_w'].T + raw['bq']
    K = k @ raw['k_proj_w'].T + raw['bk']
    V = v @ raw['v_proj_w'].T + raw['bv']
    B, N, E = Q.shape
    d = E // num_heads
    Qh = Q.reshape(B, N, num_heads, d).transpose(0, 2, 1, 3)
    Kh = K.reshape(B, N, num_heads, d).transpose(0, 2, 1, 3)
    Vh = V.reshape(B, N, num_heads, d).transpose(0, 2, 1, 3)
    s = jnp.einsum('bhnd,bhmd->bhnm', Qh, Kh) / np.sqrt(d)
    s = s + jnp.where(mask, -1e30, 0.0)[:, None, None, :]
    p = jax.nn.softmax(s, axis=-1)
    o = jnp.einsum('bhnm,bhmd->bhnd', p, Vh).transpose(0, 2, 1, 3).reshape(B, N, E)
    return o @ raw['out_w'].T + raw['out_b']


if __name__ == "__main__":
    key = jax.random.PRNGKey(0)
    ks = jax.random.split(key, 10)

    B, N = 2, 8
    frac_coords = jax.random.uniform(ks[0], (B, N, 3), jnp.float32)
    atoms = jax.random.normal(ks[1], (B, N, ATOM_DIM), jnp.float32)
    L = jax.random.normal(ks[2], (B, N, L_DIM), jnp.float32)
    mask = jnp.zeros((B, N), dtype=bool).at[1, N - 2:].set(True)  # pad last 2 keys of batch 1

    # Wq/Wk/Wv weight exactly as in __init__: concat of eye(3)*(i+1) over heads.
    W_in = jnp.concatenate([jnp.eye(3, dtype=jnp.float32) * (i + 1) for i in range(H)],
                           axis=0)                                  # (3H, 3)

    def linear_init(k_, fan_in, fan_out):
        kw, kb = jax.random.split(k_)
        bound = 1.0 / np.sqrt(fan_in)
        w = jax.random.uniform(kw, (fan_out, fan_in), jnp.float32, -bound, bound)
        b = jax.random.uniform(kb, (fan_out,), jnp.float32, -bound, bound)
        return w, b

    Wq_out_w, Wq_out_b = linear_init(ks[3], INPUT_DIM, INPUT_DIM)
    Wk_out_w, Wk_out_b = linear_init(ks[4], KDIM, KDIM)
    Wv_out_w, Wv_out_b = linear_init(ks[5], VDIM, VDIM)
    q_proj_w, bq = linear_init(ks[6], INPUT_DIM, INPUT_DIM)
    k_proj_w, bk = linear_init(ks[7], KDIM, INPUT_DIM)
    v_proj_w, bv = linear_init(ks[8], VDIM, INPUT_DIM)
    out_w, out_b = linear_init(ks[9], INPUT_DIM, INPUT_DIM)

    raw = dict(Wq_in=W_in, Wk_in=W_in, Wv_in=W_in,
               Wq_out_w=Wq_out_w, Wq_out_b=Wq_out_b,
               Wk_out_w=Wk_out_w, Wk_out_b=Wk_out_b,
               Wv_out_w=Wv_out_w, Wv_out_b=Wv_out_b,
               q_proj_w=q_proj_w, bq=bq, k_proj_w=k_proj_w, bk=bk,
               v_proj_w=v_proj_w, bv=bv, out_w=out_w, out_b=out_b)
    folded = fold_params(raw)

    # num_chunks=1: single grid step, the recommendation at this size on every generation.
    # num_chunks=2 run only as a correctness check of the chunked path.
    fwd_1 = jax.jit(functools.partial(attention_sincos_forward_pallas,
                                      num_heads=H, num_chunks=1))
    fwd_2 = jax.jit(functools.partial(attention_sincos_forward_pallas,
                                      num_heads=H, num_chunks=2))
    ref_fwd = jax.jit(functools.partial(attention_sincos_forward_ref, num_heads=H))

    out1 = jax.block_until_ready(fwd_1(folded, frac_coords, atoms, L, mask))
    out2 = jax.block_until_ready(fwd_2(folded, frac_coords, atoms, L, mask))
    ref = jax.block_until_ready(ref_fwd(raw, frac_coords, atoms, L, mask))

    assert out1.shape == (B, N, INPUT_DIM)
    assert out2.shape == (B, N, INPUT_DIM)
    # Tolerance accounts for bf16 MXU operands in the kernel vs the f32 reference.
    np.testing.assert_allclose(np.asarray(out1), np.asarray(ref), rtol=2e-2, atol=1e-2)
    np.testing.assert_allclose(np.asarray(out2), np.asarray(ref), rtol=2e-2, atol=1e-2)
    print("KERNEL_OK")
</pallas_src>

<mosaic_0001>
module attributes {stable_mosaic.version = 11 : i64} {
  func.func @fused_attn_kernel(%arg0: i32, %arg1: memref<16x3xf32, #tpu.memory_space<vmem>>, %arg2: memref<16x4xf32, #tpu.memory_space<vmem>>, %arg3: memref<16x9xf32, #tpu.memory_space<vmem>>, %arg4: memref<1x1x16xf32, #tpu.memory_space<vmem>>, %arg5: memref<3x18xf32, #tpu.memory_space<vmem>>, %arg6: memref<4x48xf32, #tpu.memory_space<vmem>>, %arg7: memref<18x48xf32, #tpu.memory_space<vmem>>, %arg8: memref<18x48xf32, #tpu.memory_space<vmem>>, %arg9: memref<9x48xf32, #tpu.memory_space<vmem>>, %arg10: memref<1x48xf32, #tpu.memory_space<vmem>>, %arg11: memref<16x16xf32, #tpu.memory_space<vmem>>, %arg12: memref<1x16xf32, #tpu.memory_space<vmem>>, %arg13: memref<16x16xf32, #tpu.memory_space<vmem>>) attributes {dimension_semantics = [#tpu.dimension_semantics<arbitrary>], iteration_bounds = array<i64: 1>, scalar_prefetch = 0 : i64, scratch_operands = 0 : i64, tpu.core_type = #tpu.core_type<tc>, window_params = [{transform_indices = @transform_0, window_bounds = array<i64: 16, 3>}, {transform_indices = @transform_1, window_bounds = array<i64: 16, 4>}, {transform_indices = @transform_2, window_bounds = array<i64: 16, 9>}, {transform_indices = @transform_3, window_bounds = array<i64: 1, 1, 16>}, {pipeline_mode = #tpu.pipeline_mode<synchronous>, transform_indices = @transform_4, window_bounds = array<i64: 3, 18>}, {pipeline_mode = #tpu.pipeline_mode<synchronous>, transform_indices = @transform_5, window_bounds = array<i64: 4, 48>}, {pipeline_mode = #tpu.pipeline_mode<synchronous>, transform_indices = @transform_6, window_bounds = array<i64: 18, 48>}, {pipeline_mode = #tpu.pipeline_mode<synchronous>, transform_indices = @transform_7, window_bounds = array<i64: 18, 48>}, {pipeline_mode = #tpu.pipeline_mode<synchronous>, transform_indices = @transform_8, window_bounds = array<i64: 9, 48>}, {pipeline_mode = #tpu.pipeline_mode<synchronous>, transform_indices = @transform_9, window_bounds = array<i64: 1, 48>}, {pipeline_mode = #tpu.pipeline_mode<synchronous>, transform_indices = @transform_10, window_bounds = array<i64: 16, 16>}, {pipeline_mode = #tpu.pipeline_mode<synchronous>, transform_indices = @transform_11, window_bounds = array<i64: 1, 16>}, {transform_indices = @transform_12, window_bounds = array<i64: 16, 16>}]} {
    %c0 = arith.constant 0 : index
    %c0_0 = arith.constant 0 : index
    %0 = vector.load %arg1[%c0, %c0_0] : memref<16x3xf32, #tpu.memory_space<vmem>>, vector<16x3xf32>
    %c0_1 = arith.constant 0 : index
    %c0_2 = arith.constant 0 : index
    %1 = vector.load %arg5[%c0_1, %c0_2] : memref<3x18xf32, #tpu.memory_space<vmem>>, vector<3x18xf32>
    %cst = arith.constant dense<0.000000e+00> : vector<16x18xf32>
    %2 = tpu.matmul %0, %1, %cst {dimension_numbers = #tpu.dot_dimension_numbers<[1], [0], [0], [1], [0, 0, 1, 1], [], []>} : vector<16x3xf32>, vector<3x18xf32>, vector<16x18xf32> -> vector<16x18xf32>
    %3 = math.sin %2 : vector<16x18xf32>
    %4 = math.cos %2 : vector<16x18xf32>
    %c0_3 = arith.constant 0 : index
    %c0_4 = arith.constant 0 : index
    %5 = vector.load %arg2[%c0_3, %c0_4] : memref<16x4xf32, #tpu.memory_space<vmem>>, vector<16x4xf32>
    %6 = arith.truncf %5 : vector<16x4xf32> to vector<16x4xbf16>
    %c0_5 = arith.constant 0 : index
    %c0_6 = arith.constant 0 : index
    %7 = vector.load %arg6[%c0_5, %c0_6] : memref<4x48xf32, #tpu.memory_space<vmem>>, vector<4x48xf32>
    %8 = arith.truncf %7 : vector<4x48xf32> to vector<4x48xbf16>
    %cst_7 = arith.constant dense<0.000000e+00> : vector<16x48xf32>
    %9 = tpu.matmul %6, %8, %cst_7 {dimension_numbers = #tpu.dot_dimension_numbers<[1], [0], [0], [1], [0, 0, 1, 1], [], []>} : vector<16x4xbf16>, vector<4x48xbf16>, vector<16x48xf32> -> vector<16x48xf32>
    %10 = arith.truncf %3 : vector<16x18xf32> to vector<16x18xbf16>
    %c0_8 = arith.constant 0 : index
    %c0_9 = arith.constant 0 : index
    %11 = vector.load %arg7[%c0_8, %c0_9] : memref<18x48xf32, #tpu.memory_space<vmem>>, vector<18x48xf32>
    %12 = arith.truncf %11 : vector<18x48xf32> to vector<18x48xbf16>
    %cst_10 = arith.constant dense<0.000000e+00> : vector<16x48xf32>
    %13 = tpu.matmul %10, %12, %cst_10 {dimension_numbers = #tpu.dot_dimension_numbers<[1], [0], [0], [1], [0, 0, 1, 1], [], []>} : vector<16x18xbf16>, vector<18x48xbf16>, vector<16x48xf32> -> vector<16x48xf32>
    %14 = arith.addf %9, %13 : vector<16x48xf32>
    %15 = arith.truncf %4 : vector<16x18xf32> to vector<16x18xbf16>
    %c0_11 = arith.constant 0 : index
    %c0_12 = arith.constant 0 : index
    %16 = vector.load %arg8[%c0_11, %c0_12] : memref<18x48xf32, #tpu.memory_space<vmem>>, vector<18x48xf32>
    %17 = arith.truncf %16 : vector<18x48xf32> to vector<18x48xbf16>
    %cst_13 = arith.constant dense<0.000000e+00> : vector<16x48xf32>
    %18 = tpu.matmul %15, %17, %cst_13 {dimension_numbers = #tpu.dot_dimension_numbers<[1], [0], [0], [1], [0, 0, 1, 1], [], []>} : vector<16x18xbf16>, vector<18x48xbf16>, vector<16x48xf32> -> vector<16x48xf32>
    %19 = arith.addf %14, %18 : vector<16x48xf32>
    %c0_14 = arith.constant 0 : index
    %c0_15 = arith.constant 0 : index
    %20 = vector.load %arg3[%c0_14, %c0_15] : memref<16x9xf32, #tpu.memory_space<vmem>>, vector<16x9xf32>
    %21 = arith.truncf %20 : vector<16x9xf32> to vector<16x9xbf16>
    %c0_16 = arith.constant 0 : index
    %c0_17 = arith.constant 0 : index
    %22 = vector.load %arg9[%c0_16, %c0_17] : memref<9x48xf32, #tpu.memory_space<vmem>>, vector<9x48xf32>
    %23 = arith.truncf %22 : vector<9x48xf32> to vector<9x48xbf16>
    %cst_18 = arith.constant dense<0.000000e+00> : vector<16x48xf32>
    %24 = tpu.matmul %21, %23, %cst_18 {dimension_numbers = #tpu.dot_dimension_numbers<[1], [0], [0], [1], [0, 0, 1, 1], [], []>} : vector<16x9xbf16>, vector<9x48xbf16>, vector<16x48xf32> -> vector<16x48xf32>
    %25 = arith.addf %19, %24 : vector<16x48xf32>
    %c0_19 = arith.constant 0 : index
    %c0_20 = arith.constant 0 : index
    %26 = vector.load %arg10[%c0_19, %c0_20] : memref<1x48xf32, #tpu.memory_space<vmem>>, vector<1x48xf32>
    %27 = vector.broadcast %26 : vector<1x48xf32> to vector<16x48xf32>
    %28 = arith.addf %25, %27 : vector<16x48xf32>
    %29 = vector.extract_strided_slice %28 {offsets = [0, 0], sizes = [16, 16], strides = [1, 1]} : vector<16x48xf32> to vector<16x16xf32>
    %30 = vector.extract_strided_slice %28 {offsets = [0, 16], sizes = [16, 16], strides = [1, 1]} : vector<16x48xf32> to vector<16x16xf32>
    %31 = vector.extract_strided_slice %28 {offsets = [0, 32], sizes = [16, 16], strides = [1, 1]} : vector<16x48xf32> to vector<16x16xf32>
    %32 = tpu.iota {dimensions = array<i32: 1>} : vector<16x16xi32>
    %c0_i32 = arith.constant 0 : i32
    %33 = vector.broadcast %c0_i32 : i32 to vector<16x16xi32>
    %34 = arith.cmpi sge, %32, %33 : vector<16x16xi32>
    %c8_i32 = arith.constant 8 : i32
    %35 = vector.broadcast %c8_i32 : i32 to vector<16x16xi32>
    %36 = arith.cmpi slt, %32, %35 : vector<16x16xi32>
    %37 = arith.andi %34, %36 : vector<16x16xi1>
    %c8_i32_21 = arith.constant 8 : i32
    %38 = vector.broadcast %c8_i32_21 : i32 to vector<16x16xi32>
    %39 = arith.cmpi sge, %32, %38 : vector<16x16xi32>
    %c16_i32 = arith.constant 16 : i32
    %40 = vector.broadcast %c16_i32 : i32 to vector<16x16xi32>
    %41 = arith.cmpi slt, %32, %40 : vector<16x16xi32>
    %42 = arith.andi %39, %41 : vector<16x16xi1>
    %cst_22 = arith.constant 0.000000e+00 : f32
    %43 = vector.broadcast %cst_22 : f32 to vector<16x16xf32>
    %44 = arith.select %37, %29, %43 : vector<16x16xi1>, vector<16x16xf32>
    %cst_23 = arith.constant 0.000000e+00 : f32
    %45 = vector.broadcast %cst_23 : f32 to vector<16x16xf32>
    %46 = arith.select %42, %29, %45 : vector<16x16xi1>, vector<16x16xf32>
    %47 = tpu.concatenate %44, %46 in 0 : vector<16x16xf32>, vector<16x16xf32> -> vector<32x16xf32>
    %cst_24 = arith.constant dense<0.000000e+00> : vector<32x16xf32>
    %48 = tpu.matmul %47, %30, %cst_24 {dimension_numbers = #tpu.dot_dimension_numbers<[1], [1], [0], [0], [0, 0, 1, 0], [], []>} : vector<32x16xf32>, vector<16x16xf32>, vector<32x16xf32> -> vector<32x16xf32>
    %cst_25 = arith.constant 0.353553385 : f32
    %49 = vector.broadcast %cst_25 : f32 to vector<32x16xf32>
    %50 = arith.mulf %48, %49 : vector<32x16xf32>
    %51 = tpu.iota {dimensions = array<i32: 0>} : vector<32x1xi32>
    %52 = tpu.iota {dimensions = array<i32: 1>} : vector<1x16xi32>
    %c0_i32_26 = arith.constant 0 : i32
    %53 = vector.broadcast %c0_i32_26 : i32 to vector<32x1xi32>
    %c8_i32_27 = arith.constant 8 : i32
    %54 = vector.broadcast %c8_i32_27 : i32 to vector<32x1xi32>
    %55 = arith.cmpi sge, %51, %54 : vector<32x1xi32>
    %c16_i32_28 = arith.constant 16 : i32
    %56 = vector.broadcast %c16_i32_28 : i32 to vector<32x1xi32>
    %57 = arith.cmpi slt, %51, %56 : vector<32x1xi32>
    %58 = arith.andi %55, %57 : vector<32x1xi1>
    %59 = arith.extui %58 : vector<32x1xi1> to vector<32x1xi32>
    %60 = arith.addi %53, %59 : vector<32x1xi32>
    %c24_i32 = arith.constant 24 : i32
    %61 = vector.broadcast %c24_i32 : i32 to vector<32x1xi32>
    %62 = arith.cmpi sge, %51, %61 : vector<32x1xi32>
    %c32_i32 = arith.constant 32 : i32
    %63 = vector.broadcast %c32_i32 : i32 to vector<32x1xi32>
    %64 = arith.cmpi slt, %51, %63 : vector<32x1xi32>
    %65 = arith.andi %62, %64 : vector<32x1xi1>
    %66 = arith.extui %65 : vector<32x1xi1> to vector<32x1xi32>
    %67 = arith.addi %60, %66 : vector<32x1xi32>
    %c0_i32_29 = arith.constant 0 : i32
    %68 = vector.broadcast %c0_i32_29 : i32 to vector<1x16xi32>
    %c8_i32_30 = arith.constant 8 : i32
    %69 = vector.broadcast %c8_i32_30 : i32 to vector<1x16xi32>
    %70 = arith.cmpi sge, %52, %69 : vector<1x16xi32>
    %71 = arith.extui %70 : vector<1x16xi1> to vector<1x16xi32>
    %72 = arith.addi %68, %71 : vector<1x16xi32>
    %73 = vector.broadcast %67 : vector<32x1xi32> to vector<32x16xi32>
    %74 = vector.broadcast %72 : vector<1x16xi32> to vector<32x16xi32>
    %75 = arith.cmpi eq, %73, %74 : vector<32x16xi32>
    %cst_31 = arith.constant -1.000000e+30 : f32
    %76 = vector.broadcast %cst_31 : f32 to vector<32x16xf32>
    %77 = arith.select %75, %50, %76 : vector<32x16xi1>, vector<32x16xf32>
    %c0_32 = arith.constant 0 : index
    %c0_33 = arith.constant 0 : index
    %c0_34 = arith.constant 0 : index
    %78 = vector.load %arg4[%c0_32, %c0_33, %c0_34] : memref<1x1x16xf32, #tpu.memory_space<vmem>>, vector<1x1x16xf32>
    %79 = vector.shape_cast %78 : vector<1x1x16xf32> to vector<1x16xf32>
    %80 = vector.broadcast %79 : vector<1x16xf32> to vector<32x16xf32>
    %81 = arith.addf %77, %80 : vector<32x16xf32>
    %cst_35 = arith.constant dense<0xFF800000> : vector<32xf32>
    %82 = vector.multi_reduction <maximumf>, %81, %cst_35 [1] : vector<32x16xf32> to vector<32xf32>
    %83 = vector.shape_cast %82 : vector<32xf32> to vector<32x1xf32>
    %84 = vector.broadcast %83 : vector<32x1xf32> to vector<32x16xf32>
    %85 = arith.subf %81, %84 : vector<32x16xf32>
    %86 = math.exp %85 : vector<32x16xf32>
    %cst_36 = arith.constant dense<0.000000e+00> : vector<32xf32>
    %87 = vector.multi_reduction <add>, %86, %cst_36 [1] : vector<32x16xf32> to vector<32xf32>
    %88 = vector.shape_cast %87 : vector<32xf32> to vector<32x1xf32>
    %89 = tpu.reciprocal %88 {approx = true} : vector<32x1xf32> -> vector<32x1xf32>
    %90 = arith.mulf %88, %89 : vector<32x1xf32>
    %cst_37 = arith.constant 2.000000e+00 : f32
    %91 = vector.broadcast %cst_37 : f32 to vector<32x1xf32>
    %92 = arith.subf %91, %90 : vector<32x1xf32>
    %93 = arith.mulf %89, %92 : vector<32x1xf32>
    %94 = vector.broadcast %93 : vector<32x1xf32> to vector<32x16xf32>
    %95 = arith.mulf %86, %94 : vector<32x16xf32>
    %96 = arith.truncf %95 : vector<32x16xf32> to vector<32x16xbf16>
    %97 = arith.truncf %31 : vector<16x16xf32> to vector<16x16xbf16>
    %cst_38 = arith.constant dense<0.000000e+00> : vector<32x16xf32>
    %98 = tpu.matmul %96, %97, %cst_38 {dimension_numbers = #tpu.dot_dimension_numbers<[1], [0], [0], [1], [0, 0, 1, 1], [], []>} : vector<32x16xbf16>, vector<16x16xbf16>, vector<32x16xf32> -> vector<32x16xf32>
    %99 = vector.extract_strided_slice %98 {offsets = [0, 0], sizes = [16, 16], strides = [1, 1]} : vector<32x16xf32> to vector<16x16xf32>
    %cst_39 = arith.constant 0.000000e+00 : f32
    %100 = vector.broadcast %cst_39 : f32 to vector<16x16xf32>
    %101 = arith.select %37, %99, %100 : vector<16x16xi1>, vector<16x16xf32>
    %102 = vector.extract_strided_slice %98 {offsets = [16, 0], sizes = [16, 16], strides = [1, 1]} : vector<32x16xf32> to vector<16x16xf32>
    %cst_40 = arith.constant 0.000000e+00 : f32
    %103 = vector.broadcast %cst_40 : f32 to vector<16x16xf32>
    %104 = arith.select %42, %102, %103 : vector<16x16xi1>, vector<16x16xf32>
    %105 = arith.addf %101, %104 : vector<16x16xf32>
    %106 = arith.truncf %105 : vector<16x16xf32> to vector<16x16xbf16>
    %c0_41 = arith.constant 0 : index
    %c0_42 = arith.constant 0 : index
    %107 = vector.load %arg11[%c0_41, %c0_42] : memref<16x16xf32, #tpu.memory_space<vmem>>, vector<16x16xf32>
    %108 = arith.truncf %107 : vector<16x16xf32> to vector<16x16xbf16>
    %cst_43 = arith.constant dense<0.000000e+00> : vector<16x16xf32>
    %109 = tpu.matmul %106, %108, %cst_43 {dimension_numbers = #tpu.dot_dimension_numbers<[1], [0], [0], [1], [0, 0, 1, 1], [], []>} : vector<16x16xbf16>, vector<16x16xbf16>, vector<16x16xf32> -> vector<16x16xf32>
    %c0_44 = arith.constant 0 : index
    %c0_45 = arith.constant 0 : index
    %110 = vector.load %arg12[%c0_44, %c0_45] : memref<1x16xf32, #tpu.memory_space<vmem>>, vector<1x16xf32>
    %111 = vector.broadcast %110 : vector<1x16xf32> to vector<16x16xf32>
    %112 = arith.addf %109, %111 : vector<16x16xf32>
    %c0_46 = arith.constant 0 : index
    %c0_47 = arith.constant 0 : index
    %113 = vector.load %arg13[%c0_46, %c0_47] : memref<16x16xf32, #tpu.memory_space<vmem>>, vector<16x16xf32>
    tpu.vector_store %arg13[%c0_46, %c0_47], %112 {strides = array<i32>} : memref<16x16xf32, #tpu.memory_space<vmem>>, vector<16x16xf32>,
    return
  }
  func.func @transform_0(%arg0: i32) -> (i32, i32) {
    %c0_i32 = arith.constant 0 : i32
    %c0_i32_0 = arith.constant 0 : i32
    return %arg0, %c0_i32 : i32, i32
  }
  func.func @transform_1(%arg0: i32) -> (i32, i32) {
    %c0_i32 = arith.constant 0 : i32
    %c0_i32_0 = arith.constant 0 : i32
    return %arg0, %c0_i32 : i32, i32
  }
  func.func @transform_2(%arg0: i32) -> (i32, i32) {
    %c0_i32 = arith.constant 0 : i32
    %c0_i32_0 = arith.constant 0 : i32
    return %arg0, %c0_i32 : i32, i32
  }
  func.func @transform_3(%arg0: i32) -> (i32, i32, i32) {
    %c0_i32 = arith.constant 0 : i32
    %c0_i32_0 = arith.constant 0 : i32
    %c0_i32_1 = arith.constant 0 : i32
    return %arg0, %c0_i32, %c0_i32_0 : i32, i32, i32
  }
  func.func @transform_4(%arg0: i32) -> (i32, i32) {
    %c0_i32 = arith.constant 0 : i32
    %c0_i32_0 = arith.constant 0 : i32
    %c0_i32_1 = arith.constant 0 : i32
    return %c0_i32, %c0_i32_0 : i32, i32
  }
  func.func @transform_5(%arg0: i32) -> (i32, i32) {
    %c0_i32 = arith.constant 0 : i32
    %c0_i32_0 = arith.constant 0 : i32
    %c0_i32_1 = arith.constant 0 : i32
    return %c0_i32, %c0_i32_0 : i32, i32
  }
  func.func @transform_6(%arg0: i32) -> (i32, i32) {
    %c0_i32 = arith.constant 0 : i32
    %c0_i32_0 = arith.constant 0 : i32
    %c0_i32_1 = arith.constant 0 : i32
    return %c0_i32, %c0_i32_0 : i32, i32
  }
  func.func @transform_7(%arg0: i32) -> (i32, i32) {
    %c0_i32 = arith.constant 0 : i32
    %c0_i32_0 = arith.constant 0 : i32
    %c0_i32_1 = arith.constant 0 : i32
    return %c0_i32, %c0_i32_0 : i32, i32
  }
  func.func @transform_8(%arg0: i32) -> (i32, i32) {
    %c0_i32 = arith.constant 0 : i32
    %c0_i32_0 = arith.constant 0 : i32
    %c0_i32_1 = arith.constant 0 : i32
    return %c0_i32, %c0_i32_0 : i32, i32
  }
  func.func @transform_9(%arg0: i32) -> (i32, i32) {
    %c0_i32 = arith.constant 0 : i32
    %c0_i32_0 = arith.constant 0 : i32
    %c0_i32_1 = arith.constant 0 : i32
    return %c0_i32, %c0_i32_0 : i32, i32
  }
  func.func @transform_10(%arg0: i32) -> (i32, i32) {
    %c0_i32 = arith.constant 0 : i32
    %c0_i32_0 = arith.constant 0 : i32
    %c0_i32_1 = arith.constant 0 : i32
    return %c0_i32, %c0_i32_0 : i32, i32
  }
  func.func @transform_11(%arg0: i32) -> (i32, i32) {
    %c0_i32 = arith.constant 0 : i32
    %c0_i32_0 = arith.constant 0 : i32
    %c0_i32_1 = arith.constant 0 : i32
    return %c0_i32, %c0_i32_0 : i32, i32
  }
  func.func @transform_12(%arg0: i32) -> (i32, i32) {
    %c0_i32 = arith.constant 0 : i32
    %c0_i32_0 = arith.constant 0 : i32
    return %arg0, %c0_i32 : i32, i32
  }
}

</mosaic_0001>

<bundles_post_ra>
// kernel: attention_sincos_forward_pallas.1
= control target key start
LH: loop header
LB: loop body
LE: loop exit
PB: predicated region body
PF: predicated region fallthrough
CT: control target
= control target key end

     0   :  { %17 = vsyncpa [#allocation3], 0  ;;  %s1885_s0 = inlined_call_operand.vmem [shape: f32[16,3], index: 0, kind: input, shape index: {}]   ;;  %s1886_s1 = inlined_call_operand.vmem [shape: f32[16,4], index: 1, kind: input, shape index: {}]   ;;  %s1887_s2 = inlined_call_operand.vmem [shape: f32[16,9], index: 2, kind: input, shape index: {}]   ;;  %s1888_s3 = inlined_call_operand.vmem [shape: f32[1,1,16], index: 3, kind: input, shape index: {}]   ;;  %s1889_s4 = inlined_call_operand.hbm [shape: f32[3,18], index: 4, kind: input, shape index: {}]   ;;  %s1890_s5 = inlined_call_operand.hbm [shape: f32[4,48], index: 5, kind: input, shape index: {}]   ;;  %s1891_s6 = inlined_call_operand.vmem [shape: f32[18,48], index: 6, kind: input, shape index: {}]   ;;  %s1892_s7 = inlined_call_operand.vmem [shape: f32[18,48], index: 7, kind: input, shape index: {}]   ;;  %s1893_s8 = inlined_call_operand.hbm [shape: f32[9,48], index: 8, kind: input, shape index: {}]   ;;  %s1894_s9 = inlined_call_operand.hbm [shape: f32[1,48], index: 9, kind: input, shape index: {}]   ;;  %s1895_s10 = inlined_call_operand.hbm [shape: f32[16,16], index: 10, kind: input, shape index: {}]   ;;  %s1896_s11 = inlined_call_operand.hbm [shape: f32[1,16], index: 11, kind: input, shape index: {}]   ;;  %s1897_s12 = inlined_call_operand.hbm [shape: f32[16,16], index: 12, kind: output, shape index: {}]  }
   0x1   :  { %18 = vsyncpa [#allocation6], 0 }
   0x2   :  { %19 = vsyncpa [#allocation9], 0 }
   0x3   :  { %20 = vsyncpa [#allocation12], 0 }
   0x4   :  { %21 = vsyncpa [#allocation4], 0  ;;  %s1563_s21 = smov [#allocation5]   ;;  %s1564_s23 = smov [#allocation8]  }
   0x5   :  { %s46_s22 = sshll.u32 %s1563_s21, 4  ;;  %s72_s24 = sshll.u32 %s1564_s23, 4  ;;  %s47_s22 = int_to_ptr.vmem [resolvable:$true] %s46_s22  ;;  %s73_s24 = int_to_ptr.vmem [resolvable:$true] %s72_s24 }
   0x6   :  { %s1421_s25 = scalar_lea.vmem %s47_s22, 64  ;;  %p1426_p1 = scmp.lt.s32.totalorder %s47_s22, %s47_s22 }
   0x7   :  { %p1422_p0 = scmp.ne.s32.totalorder %s47_s22, %s1421_s25  ;;  %p1427_p2 = scmp.lt.s32.totalorder %s1421_s25, %s1421_s25 }
   0x9   :  { %p1428_p3 = por %p1427_p2, %p1426_p1 }
   0xb   :  { %p1429_p4 = pnand %p1428_p3, %p1422_p0 }
   0xd   :  { %1432 = shalt.err (!%p1429_p4)
}
   0xe   :  { %49 = dma.hbm_to_vmem [thread:$0]  %s1890_s5, 64, %s47_s22, [#allocation6]  }
   0xf   :  { %s1441_s28 = scalar_lea.vmem %s73_s24, 16  ;;  %s1445_s29 = scalar_lea.vmem %s73_s24, 32 }
  0x10   :  { %p1442_p5 = scmp.ne.s32.totalorder %s73_s24, %s1441_s28  ;;  %p1446_p6 = scmp.lt.s32.totalorder %s73_s24, %s73_s24 }
  0x11   :  { %p1447_p7 = scmp.lt.s32.totalorder %s1445_s29, %s1441_s28 }
  0x13   :  { %p1448_p8 = por %p1447_p7, %p1446_p6 }
  0x15   :  { %p1449_p9 = pnand %p1448_p8, %p1442_p5 }
  0x17   :  { %1452 = shalt.err (!%p1449_p9)
}
  0x18   :  { %75 = dma.hbm_to_vmem [thread:$0]  %s1894_s9, 16, %s73_s24, [#allocation9]  }
  0x19   :  { %s1565_s14 = smov [#allocation2]   ;;  %s1566_s16 = smov [#allocation7]  }
  0x1a   :  { %s36_s15 = sshll.u32 %s1565_s14, 4  ;;  %s59_s17 = sshll.u32 %s1566_s16, 4  ;;  %s37_s15 = int_to_ptr.vmem [resolvable:$true] %s36_s15  ;;  %s60_s17 = int_to_ptr.vmem [resolvable:$true] %s59_s17 }
  0x1b   :  { %s1461_s18 = scalar_lea.vmem %s37_s15, 64  ;;  %p1466_p11 = scmp.lt.s32.totalorder %s37_s15, %s37_s15 }
  0x1c   :  { %p1462_p10 = scmp.ne.s32.totalorder %s37_s15, %s1461_s18  ;;  %p1467_p12 = scmp.lt.s32.totalorder %s1461_s18, %s1461_s18 }
  0x1e   :  { %p1468_p13 = por %p1467_p12, %p1466_p11 }
  0x20   :  { %p1469_p0 = pnand %p1468_p13, %p1462_p10 }
  0x22   :  { %1472 = shalt.err (!%p1469_p0)
}
  0x23   :  { %39 = dma.hbm_to_vmem [thread:$0]  %s1889_s4, 64, %s37_s15, [#allocation3]  }
  0x24   :  { %s1481_s20 = scalar_lea.vmem %s60_s17, 256  ;;  %p1486_p2 = scmp.lt.s32.totalorder %s60_s17, %s60_s17 }
  0x25   :  { %p1482_p1 = scmp.ne.s32.totalorder %s60_s17, %s1481_s20  ;;  %p1487_p3 = scmp.lt.s32.totalorder %s1481_s20, %s1481_s20 }
  0x27   :  { %p1488_p4 = por %p1487_p3, %p1486_p2 }
  0x29   :  { %p1489_p5 = pnand %p1488_p4, %p1482_p1 }
  0x2b   :  { %1492 = shalt.err (!%p1489_p5)
}
  0x2c   :  { %s1567_s9 = smov 128   ;;  %s1568_s21 = smov 8  }
  0x2d   :  { %65 = dma.hbm_to_vmem [thread:$0]  %s1893_s8, 256, %s60_s17, [#allocation6], %s1567_s9, %s1567_s9, %s1568_s21  }
  0x2e   :  { %s1569_s24 = smov [#allocation10]   ;;  %s1570_s26 = smov [#allocation11]  }
  0x2f   :  { %s81_s25 = sshll.u32 %s1569_s24, 4  ;;  %s94_s4 = sshll.u32 %s1570_s26, 4  ;;  %s82_s25 = int_to_ptr.vmem [resolvable:$true] %s81_s25  ;;  %s95_s4 = int_to_ptr.vmem [resolvable:$true] %s94_s4 }
  0x30   :  { %s1501_s27 = scalar_lea.vmem %s82_s25, 256  ;;  %p1506_p7 = scmp.lt.s32.totalorder %s82_s25, %s82_s25 }
  0x31   :  { %p1502_p6 = scmp.ne.s32.totalorder %s82_s25, %s1501_s27  ;;  %p1507_p8 = scmp.lt.s32.totalorder %s1501_s27, %s1501_s27 }
  0x33   :  { %p1508_p9 = por %p1507_p8, %p1506_p7 }
  0x35   :  { %p1509_p10 = pnand %p1508_p9, %p1502_p6 }
  0x37   :  { %1512 = shalt.err (!%p1509_p10)
}
  0x38   :  { %87 = dma.hbm_to_vmem [thread:$0]  %s1895_s10, 256, %s82_s25, [#allocation9], %s1567_s9, %s1567_s9, %s1568_s21  }
  0x39   :  { %s1521_s8 = scalar_lea.vmem %s95_s4, 16  ;;  %s1525_s30 = scalar_lea.vmem %s95_s4, 32 }
  0x3a   :  { %p1522_p11 = scmp.ne.s32.totalorder %s95_s4, %s1521_s8  ;;  %p1526_p12 = scmp.lt.s32.totalorder %s95_s4, %s95_s4 }
  0x3b   :  { %p1527_p13 = scmp.lt.s32.totalorder %s1525_s30, %s1521_s8 }
  0x3d   :  { %p1528_p0 = por %p1527_p13, %p1526_p12 }
  0x3f   :  { %p1529_p1 = pnand %p1528_p0, %p1522_p11 }
  0x41   :  { %1532 = shalt.err (!%p1529_p1)
}
  0x42   :  { %97 = dma.hbm_to_vmem [thread:$0]  %s1896_s11, 16, %s95_s4, [#allocation12]  }
  0x43   :  { %1553 = dma.done.wait [#allocation3], 64  }
  0x44   :  { %1554 = vsyncadd [#allocation3], 4294967232 }
  0x45   :  { %1555 = dma.done.wait [#allocation6], 320  }
  0x46   :  { %1556 = vsyncadd [#allocation6], 4294966976 }
  0x47   :  { %1557 = dma.done.wait [#allocation9], 272  }
  0x48   :  { %1558 = vsyncadd [#allocation9], 4294967024 }
  0x49   :  { %1559 = dma.done.wait [#allocation12], 16  }
  0x4a   :  { %1560 = vsyncadd [#allocation12], 4294967280  ;;  %vm127_vm0 = vcmask 1042432   ;;  %vm120_vm1 = vcmask 23552   ;;  %v119_v0 = vld [vmem:[#allocation2] sm:$0x7] }
  0x4b   :  { %v117_v1 = vld [vmem:[%s1885_s0] sm:$0xff]  ;;  %v118_v2 = vld [vmem:[%s1885_s0 + $0x8] sm:$0xff]  ;;  %1306 = vmatprep.subr.msk.mxu1 %vm127_vm0, %v119_v0  ;;  %vm684_vm2 = vcmask 1041408   ;;  %v1571_v5 = vmov 0.0   ;;  %v628_v9 = vld [vmem:[%s1891_s6 + $0x10] sm:$0x3] }
  0x4c   :  { %1308 = vmatprep.mubr.msk.f32.mxu1 %vm120_vm1, %v117_v1  ;;  %1307 = vmatpush3.msk.msra.mxu1 %vm127_vm0, %v119_v0  ;;  %v623_v3 = vld [vmem:[#allocation5] sm:$0xf]  ;;  %v621_v8 = vld [vmem:[%s1886_s1 + $0x8] sm:$0xff]  ;;  %v630_v11 = vpack.c.bf16 %v628_v9, %v628_v9  ;;  %v732_v12 = vld [vmem:[%s1892_s7 + $0x10] sm:$0x3]  ;;  %vm1572_vm3 = vmmov 0  }
  0x4d   :  { %1309 = vmatmul.mubr.msk.f32.vlgmr.msra.gmra.mxu1 %vm120_vm1, %v118_v2  ;;  %v624_v4 = vpack.c.bf16 %v623_v3, %v623_v3  ;;  %1319 = vmatprep.subr.bf16.mxu0 %v1571_v5  ;;  %v620_v7 = vld [vmem:[%s1886_s1] sm:$0xff]  ;;  %vm680_vm4 = vcmask 31744   ;;  %vm635_vm5 = vcmask 1040384   ;;  %v734_v13 = vpack.c.bf16 %v732_v12, %v732_v12  ;;  %v627_v17 = vld [vmem:[%s1891_s6 + $0x8] sm:$0xff]  ;;  %s1582_s10 = smov [#allocation13]  }
  0x4e   :  { %1311 = vmatprep.subr.bf16.mxu1 %v1571_v5  ;;  %v622_v10 = vpack.c.bf16 %v621_v8, %v620_v7  ;;  %1321 = vmatprep.mubr.msk.bf16.mxu0 %vm1572_vm3, %v1571_v5  ;;  %v637_v14 = vsel %vm635_vm5, %v630_v11, 0  ;;  %v626_v16 = vld [vmem:[%s1891_s6] sm:$0xff]  ;;  %v731_v20 = vld [vmem:[%s1892_s7 + $0x8] sm:$0xff]  ;;  %v1573_v42 = vmov 683565275   ;;  %s1224_s15 = sshll.u32 %s1582_s10, 4  ;;  %s1225_s15 = int_to_ptr.vmem [resolvable:$true] %s1224_s15 }
  0x4f   :  { %v686_v6 = vsel %vm684_vm2, %v624_v4, 0  ;;  %1315 = vmatprep.mubr.msk.bf16.mxu1 %vm1572_vm3, %v1571_v5  ;;  %1312 = vmatpush3.bf16.msra.mxu1 %v637_v14  ;;  %v739_v15 = vsel %vm635_vm5, %v734_v13, 0  ;;  %v730_v18 = vld [vmem:[%s1892_s7] sm:$0xff]  ;;  %v629_v19 = vpack.c.bf16 %v627_v17, %v626_v16  ;;  %v1574_v45 = vmov 2475754826   ;;  %s1533_s16 = scalar_lea.vmem %s1225_s15, 256  ;;  %p1538_p3 = scmp.lt.s32.totalorder %s1225_s15, %s1225_s15 }
  0x50   :  { %1320 = vmatpush3.bf16.msra.mxu0 %v686_v6  ;;  %1313 = vmatprep.subr.bf16.mxu1 %v1571_v5  ;;  %v733_v21 = vpack.c.bf16 %v731_v20, %v730_v18  ;;  %v1575_v47 = vmov 2131351028   ;;  %v1576_v49 = vmov 2102212464   ;;  %v1577_v51 = vmov 920167782   ;;  %p1534_p2 = scmp.ne.s32.totalorder %s1225_s15, %s1533_s16  ;;  %p1539_p4 = scmp.lt.s32.totalorder %s1533_s16, %s1533_s16 }
  0x51   :  { %1325 = vmatprep.subr.bf16.mxu0 %v1571_v5  ;;  %v1578_v58 = vmov 1326507024  }
  0x52   :  { %p1540_p5 = por %p1539_p4, %p1538_p3 }
  0x53   :  { %1322 = vmatmul.mubr.msk.bf16.vlgmr.msra.gmra.mxu0 %vm680_vm4, %v622_v10  ;;  %1314 = vmatpush3.bf16.msra.mxu1 %v629_v19 }
  0x54   :  { %1329 = vmatprep.mubr.msk.bf16.mxu0 %vm1572_vm3, %v1571_v5  ;;  %1326 = vmatpush3.bf16.msra.mxu0 %v739_v15  ;;  %p1541_p6 = pnand %p1540_p5, %p1534_p2 }
  0x55   :  { %1327 = vmatprep.subr.bf16.mxu0 %v1571_v5  ;;  %1333 = vmatprep.subr.bf16.mxu1 %v1571_v5 }
  0x58   :  { %1328 = vmatpush3.bf16.msra.mxu0 %v733_v21 }
 0x10d   :  { %v1714_v22 = vpop.f32.mrf.mxu1 }
 0x10e   :  { %v310_v23 = vand.u32 2147483647, %v1714_v22  ;;  %v313_v24 = vand.u32 2139095040, %v1714_v22  ;;  %vm312_vm5 = vcmp.lt.s32.totalorder %v1714_v22, 0 }
 0x10f   :  { %v1718_v25 = vpop.f32.mrf.mxu1 }
 0x110   :  { %v314_v26 = vshrl.u32 %v313_v24, 23  ;;  %v317_v27 = vand.u32 8388607, %v310_v23  ;;  %v209_v28 = vand.u32 2139095040, %v1718_v25  ;;  %v206_v30 = vand.u32 2147483647, %v1718_v25 }
 0x112   :  { %v1246_v29 = vadd.s32 4294967169, %v314_v26  ;;  %v210_v31 = vshrl.u32 %v209_v28, 23  ;;  %v318_v33 = vor.u32 8388608, %v317_v27  ;;  %v213_v35 = vand.u32 8388607, %v206_v30 }
 0x114   :  { %v320_v32 = vadd.s32 1, %v1246_v29  ;;  %v1242_v34 = vadd.s32 4294967169, %v210_v31  ;;  %v1726_v40 = vshll.u32 %v318_v33, 8  ;;  %v214_v44 = vor.u32 8388608, %v213_v35 }
 0x116   :  { %vm321_vm6 = vcmp.gt.s32.totalorder %v320_v32, 0  ;;  %v216_v37 = vadd.s32 1, %v1242_v34  ;;  %v254_v14 = vshll.u32 %v214_v44, 8 }
 0x117   :  { %v322_v36 = vsel %vm321_vm6, %v320_v32, 0  ;;  %vm1773_vm6 = vcmp.le.f32.partialorder %v310_v23, 0.7853982 }
 0x118   :  { %v323_v38 = vshrl.u32 %v322_v36, 5  ;;  %v324_v39 = vand.u32 31, %v322_v36  ;;  %vm217_vm7 = vcmp.gt.s32.totalorder %v216_v37, 0 }
 0x119   :  { %v218_v63 = vsel %vm217_vm7, %v216_v37, 0  ;;  %vm208_vm7 = vcmp.lt.s32.totalorder %v1718_v25, 0 }
 0x11a   :  { %v325_v41 = vsub.s32 32, %v324_v39  ;;  %v327_v43 = vshll.u32 %v1573_v42, %v324_v39  ;;  %v330_v46 = vshll.u32 %v1574_v45, %v324_v39  ;;  %v333_v48 = vshll.u32 %v1575_v47, %v324_v39 }
 0x11b   :  { %v336_v50 = vshll.u32 %v1576_v49, %v324_v39  ;;  %v339_v52 = vshll.u32 %v1577_v51, %v324_v39  ;;  %vm342_vm8 = vcmp.lt.s32.totalorder %v323_v38, 1  ;;  %vm344_vm9 = vcmp.lt.s32.totalorder %v323_v38, 3 }
 0x11c   :  { %v328_v53 = vshrl.u32 %v1574_v45, %v325_v41  ;;  %v331_v54 = vshrl.u32 %v1575_v47, %v325_v41  ;;  %v334_v55 = vshrl.u32 %v1576_v49, %v325_v41  ;;  %v326_v56 = vshrl.u32 %v1573_v42, %v325_v41 }
 0x11d   :  { %v337_v57 = vshrl.u32 %v1577_v51, %v325_v41  ;;  %v340_v59 = vshrl.u32 %v1578_v58, %v325_v41  ;;  %vm345_vm10 = vcmp.lt.s32.totalorder %v323_v38, 4  ;;  %v220_v2 = vand.u32 31, %v218_v63 }
 0x11e   :  { %v329_v60 = vor.u32 %v328_v53, %v327_v43  ;;  %v332_v61 = vor.u32 %v331_v54, %v330_v46  ;;  %v335_v62 = vor.u32 %v334_v55, %v333_v48  ;;  %vm343_vm11 = vcmp.lt.s32.totalorder %v323_v38, 2 }
 0x11f   :  { %v338_v0 = vor.u32 %v337_v57, %v336_v50  ;;  %v341_v1 = vor.u32 %v340_v59, %v339_v52  ;;  %v221_v11 = vsub.s32 32, %v220_v2  ;;  %v219_v18 = vshrl.u32 %v218_v63, 5 }
 0x120   :  { %v346_v3 = vsel %vm342_vm8, %v326_v56, %v329_v60  ;;  %v347_v4 = vsel %vm345_vm10, %v335_v62, 2102212464  ;;  %v350_v6 = vsel %vm342_vm8, %v329_v60, %v332_v61  ;;  %v354_v7 = vsel %vm342_vm8, %v332_v61, %v335_v62 }
 0x121   :  { %v348_v8 = vsel %vm344_vm9, %v332_v61, %v347_v4  ;;  %v351_v9 = vsel %vm345_vm10, %v338_v0, 920167782  ;;  %v355_v10 = vsel %vm345_vm10, %v341_v1, 1326507024  ;;  %v223_v26 = vshll.u32 %v1573_v42, %v220_v2 }
 0x122   :  { %v352_v12 = vsel %vm344_vm9, %v335_v62, %v351_v9  ;;  %v356_v13 = vsel %vm344_vm9, %v338_v0, %v355_v10  ;;  %v349_v15 = vsel %vm343_vm11, %v346_v3, %v348_v8  ;;  %v224_v27 = vshrl.u32 %v1574_v45, %v221_v11 }
 0x123   :  { %v353_v16 = vsel %vm343_vm11, %v350_v6, %v352_v12  ;;  %v357_v17 = vsel %vm343_vm11, %v354_v7, %v356_v13  ;;  %v226_v28 = vshll.u32 %v1574_v45, %v220_v2  ;;  %v227_v29 = vshrl.u32 %v1575_v47, %v221_v11 }
 0x124   :  { %v1738_v19 = vmul.u32.u64.low %v1726_v40, %v357_v17  ;;  %v1739_v20 = vmul.u32.u64.high %v1726_v40, %v357_v17, %v1738_v19  ;;  %v1742_v21 = vmul.u32.u64.low %v1726_v40, %v353_v16  ;;  %v1743_v24 = vmul.u32.u64.high %v1726_v40, %v353_v16, %v1742_v21 }
 0x125   :  { %v229_v31 = vshll.u32 %v1575_v47, %v220_v2  ;;  %v230_v32 = vshrl.u32 %v1576_v49, %v221_v11  ;;  %v232_v33 = vshll.u32 %v1576_v49, %v220_v2  ;;  %v233_v34 = vshrl.u32 %v1577_v51, %v221_v11 }
 0x126   :  { %v225_v35 = vor.u32 %v224_v27, %v223_v26  ;;  %v228_v36 = vor.u32 %v227_v29, %v226_v28  ;;  %v235_v37 = vshll.u32 %v1577_v51, %v220_v2  ;;  %v236_v38 = vshrl.u32 %v1578_v58, %v221_v11 }
 0x127   :  { %v365_v39 = vmul.u32 %v1726_v40, %v349_v15  ;;  %vm367_vm12 = vc.u32 %v1739_v20, %v1742_v21  ;;  %v368_v41 = vadd.s32 1, %v1743_v24  ;;  %v231_v43 = vor.u32 %v230_v32, %v229_v31 }
 0x128   :  { %v222_v44 = vshrl.u32 %v1573_v42, %v221_v11  ;;  %v234_v45 = vor.u32 %v233_v34, %v232_v33  ;;  %v237_v46 = vor.u32 %v236_v38, %v235_v37  ;;  %vm238_vm13 = vcmp.lt.s32.totalorder %v219_v18, 1 }
 0x129   :  { %v369_v47 = vsel %vm367_vm12, %v368_v41, %v1743_v24  ;;  %vm240_vm14 = vcmp.lt.s32.totalorder %v219_v18, 3  ;;  %vm241_vm15 = vcmp.lt.s32.totalorder %v219_v18, 4  ;;  %v246_v48 = vsel %vm238_vm13, %v225_v35, %v228_v36 }
 0x12a   :  { %v370_v49 = vadd.s32 %v369_v47, %v365_v39  ;;  %v243_v50 = vsel %vm241_vm15, %v231_v43, 2102212464  ;;  %v247_v51 = vsel %vm241_vm15, %v234_v45, 920167782  ;;  %v250_v40 = vsel %vm238_vm13, %v228_v36, %v231_v43 }
 0x12b   :  { %vm239_vm0 = vcmp.lt.s32.totalorder %v219_v18, 2  ;;  %v242_v52 = vsel %vm238_vm13, %v222_v44, %v225_v35  ;;  %v248_v53 = vsel %vm240_vm14, %v231_v43, %v247_v51  ;;  %v251_v54 = vsel %vm241_vm15, %v237_v46, 1326507024 }
 0x12c   :  { %v371_v55 = vadd.s32 536870912, %v370_v49  ;;  %v244_v56 = vsel %vm240_vm14, %v228_v36, %v243_v50  ;;  %v249_v57 = vsel %vm239_vm0, %v246_v48, %v248_v53  ;;  %v252_v42 = vsel %vm240_vm14, %v234_v45, %v251_v54 }
 0x12d   :  { %v253_v58 = vsel %vm239_vm0, %v250_v40, %v252_v42  ;;  %v1753_v59 = vmul.u32.u64.low %v254_v14, %v249_v57  ;;  %v1754_v60 = vmul.u32.u64.high %v254_v14, %v249_v57, %v1753_v59  ;;  %v245_v0 = vsel %vm239_vm0, %v242_v52, %v244_v56 }
 0x12e   :  { %v1756_v61 = vshrl.u32 %v371_v55, 30  ;;  %v1758_v62 = vmul.u32.u64.low %v254_v14, %v253_v58  ;;  %v1759_v63 = vmul.u32.u64.high %v254_v14, %v253_v58, %v1758_v62  ;;  %v261_v4 = vmul.u32 %v254_v14, %v245_v0  ;;  %v787_v0 = vld [vmem:[#allocation7] sm:$0xff] }
 0x12f   :  { %v264_v2 = vadd.s32 1, %v1754_v60  ;;  %v366_v18 = vadd.s32 %v1742_v21, %v1739_v20  ;;  %vm207_vm8 = vcmp.le.f32.partialorder %v206_v30, 0.7853982  ;;  %vm794_vm9 = vcmask 1043456  }
 0x130   :  { %v373_v1 = vshll.u32 %v1756_v61, 30  ;;  %vm263_vm1 = vc.u32 %v1759_v63, %v1753_v59  ;;  %v262_v41 = vadd.s32 %v1753_v59, %v1759_v63  ;;  %v396_v54 = vsub.s32 4, %v1756_v61 }
 0x131   :  { %v265_v6 = vsel %vm263_vm1, %v264_v2, %v1754_v60  ;;  %vm795_vm10 = vcmask 1044480   ;;  %vm631_vm11 = vcmask 146432  }
 0x132   :  { %v374_v3 = vsub.s32 %v370_v49, %v373_v1  ;;  %v266_v8 = vadd.s32 %v265_v6, %v261_v4  ;;  %v397_v57 = vsel %vm312_vm5, %v396_v54, %v1756_v61  ;;  %v788_v1 = vld [vmem:[#allocation7 + $0x8] sm:$0x1]  ;;  %v1579_v61 = vmov 65535  }
 0x133   :  { %v399_v59 = vsel %vm1773_vm6, 0, %v397_v57  ;;  %v789_v6 = vpack.c.bf16 %v788_v1, %v787_v0 }
 0x134   :  { %v376_v7 = vsub.s32 0, %v374_v3  ;;  %v267_v10 = vadd.s32 536870912, %v266_v8  ;;  %v403_v62 = vadd.s32 3, %v399_v59 }
 0x136   :  { %v1247_v9 = vmin.u32 %v376_v7, %v374_v3  ;;  %v268_v12 = vshrl.u32 %v267_v10, 30  ;;  %v404_v7 = vand.u32 3, %v403_v62 }
 0x138   :  { %v378_v11 = vclz %v1247_v9  ;;  %v269_v15 = vshll.u32 %v268_v12, 30  ;;  %v292_v23 = vsub.s32 4, %v268_v12  ;;  %vm406_vm12 = vcmp.eq.s32.totalorder %v404_v7, 0 }
 0x139   :  { %vm409_vm13 = vcmp.eq.s32.totalorder %v404_v7, 2  ;;  %vm405_vm0 = vcmp.lt.s32.totalorder %v404_v7, 2 }
 0x13a   :  { %v1248_v13 = vadd.s32 4294967294, %v378_v11  ;;  %v270_v17 = vsub.s32 %v266_v8, %v269_v15  ;;  %v293_v60 = vsel %vm208_vm7, %v292_v23, %v268_v12  ;;  %v610_v8 = vand.u32 3, %v399_v59  ;;  %v1262_v59 = vld [vmem:[#allocation8] ss:$0 sm:$0xff] }
 0x13b   :  { %v295_v63 = vsel %vm207_vm8, 0, %v293_v60 }
 0x13c   :  { %vm1249_vm2 = vcmp.lt.s32.totalorder %v1248_v13, 0  ;;  %v272_v24 = vsub.s32 0, %v270_v17  ;;  %v299_v30 = vadd.s32 3, %v295_v63  ;;  %vm612_vm14 = vcmp.eq.s32.totalorder %v610_v8, 0 }
 0x13d   :  { %v381_v16 = vsel %vm1249_vm2, 0, %v1248_v13  ;;  %v507_v13 = vand.u32 3, %v295_v63  ;;  %vm615_vm15 = vcmp.eq.s32.totalorder %v610_v8, 2  ;;  %vm611_vm1 = vcmp.lt.s32.totalorder %v610_v8, 2 }
 0x13e   :  { %v382_v19 = vsub.s32 32, %v381_v16  ;;  %v386_v14 = vsub.s32 4294967266, %v381_v16  ;;  %v383_v26 = vshll.u32 %v374_v3, %v381_v16  ;;  %v1243_v29 = vmin.u32 %v272_v24, %v270_v17 }
 0x13f   :  { %v796_v3 = vsel %vm794_vm9, 4294967295, %v1579_v61  ;;  %v300_v12 = vand.u32 3, %v299_v30  ;;  %vm509_vm2 = vcmp.eq.s32.totalorder %v507_v13, 0  ;;  %vm402_vm9 = vweird.f32 %v1714_v22 }
 0x140   :  { %v384_v27 = vshrl.u32 %v366_v18, %v382_v19  ;;  %v387_v28 = vadd.s32 127, %v386_v14  ;;  %v274_v33 = vclz %v1243_v29  ;;  %v797_v9 = vsel %vm795_vm10, %v796_v3, 0 }
 0x141   :  { %v799_v15 = vand.u32 %v797_v9, %v789_v6  ;;  %vm298_vm10 = vweird.f32 %v1718_v25 }
 0x142   :  { %v385_v31 = vor.u32 %v384_v27, %v383_v26  ;;  %v388_v32 = vshll.u32 %v387_v28, 23  ;;  %v1244_v35 = vadd.s32 4294967294, %v274_v33 }
 0x144   :  { %v389_v34 = vor.u32 4788187, %v388_v32  ;;  %v392_v37 = vcvt.s32.f32 %v385_v31  ;;  %vm1245_vm4 = vcmp.lt.s32.totalorder %v1244_v35, 0 }
 0x145   :  { %v277_v39 = vsel %vm1245_vm4, 0, %v1244_v35  ;;  %vm302_vm4 = vcmp.eq.s32.totalorder %v300_v12, 0 }
 0x146   :  { %v390_v36 = vand.u32 2147483647, %v389_v34  ;;  %v278_v20 = vsub.s32 32, %v277_v39  ;;  %v282_v21 = vsub.s32 4294967266, %v277_v39  ;;  %v279_v44 = vshll.u32 %v270_v17, %v277_v39 }
 0x148   :  { %v393_v38 = vmul.f32 %v392_v37, %v390_v36  ;;  %v280_v45 = vshrl.u32 %v262_v41, %v278_v20  ;;  %v283_v46 = vadd.s32 127, %v282_v21 }
 0x14a   :  { %v394_v43 = vxor.u32 2147483648, %v393_v38  ;;  %v281_v49 = vor.u32 %v280_v45, %v279_v44  ;;  %v284_v50 = vshll.u32 %v283_v46, 23  ;;  %v722_v44 = vpop.f32.mrf.mxu0 }
 0x14c   :  { %v395_v47 = vsel %vm312_vm5, %v394_v43, %v393_v38  ;;  %v285_v40 = vor.u32 4788187, %v284_v50  ;;  %v288_v53 = vcvt.s32.f32 %v281_v49  ;;  %vm305_vm5 = vcmp.eq.s32.totalorder %v300_v12, 2  ;;  %v1323_v45 = vpop.f32.mrf.mxu0 }
 0x14d   :  { %v398_v51 = vsel %vm1773_vm6, %v1714_v22, %v395_v47  ;;  %vm512_vm6 = vcmp.eq.s32.totalorder %v507_v13, 2  ;;  %v784_v22 = vld [vmem:[%s1887_s2] sm:$0xff] }
 0x14e   :  { %1389 = vcosq.f32 %v398_v51  ;;  %v286_v52 = vand.u32 2147483647, %v285_v40  ;;  %v725_v46 = vpop.f32.mrf.mxu0  ;;  %v853_v40 = vlaneseq }
 0x14f   :  { %1391 = vsinq.f32 %v398_v51 }
 0x150   :  { %v289_v55 = vmul.f32 %v288_v53, %v286_v52  ;;  %v1324_v47 = vpop.f32.mrf.mxu0  ;;  %v1802_v23 = vand.u32 127, %v853_v40 }
 0x152   :  { %v290_v56 = vxor.u32 2147483648, %v289_v55 }
 0x154   :  { %v291_v42 = vsel %vm208_vm7, %v290_v56, %v289_v55  ;;  %vm301_vm7 = vcmp.lt.s32.totalorder %v300_v12, 2 }
 0x155   :  { %v294_v58 = vsel %vm207_vm8, %v1718_v25, %v291_v42  ;;  %vm508_vm8 = vcmp.lt.s32.totalorder %v507_v13, 2  ;;  %v785_v25 = vld [vmem:[%s1887_s2 + $0x8] sm:$0xff]  ;;  %s1580_s2 = smov 112  }
 0x156   :  { %1393 = vcosq.f32 %v294_v58  ;;  %v786_v43 = vpack.c.bf16 %v785_v25, %v784_v22 }
 0x157   :  { %1395 = vsinq.f32 %v294_v58 }
 0x15b   :  { %v1390_v2 = vpop.eup %1389 }
 0x15c   :  { %v1392_v4 = vpop.eup %1391  ;;  %v410_v11 = vxor.u32 2147483648, %v1390_v2 }
 0x15d   :  { %v407_v10 = vxor.u32 2147483648, %v1392_v4 }
 0x15e   :  { %v411_v18 = vsel %vm409_vm13, %v410_v11, %v1392_v4  ;;  %v617_v14 = vsel %vm615_vm15, %v410_v11, %v1392_v4  ;;  %vm871_vm13 = vcmask 130048   ;;  %vm859_vm15 = vcmp.lt.s32.totalorder %v1802_v23, 16 }
 0x15f   :  { %v408_v17 = vsel %vm406_vm12, %v1390_v2, %v407_v10  ;;  %v614_v19 = vsel %vm612_vm14, %v1390_v2, %v407_v10  ;;  %vm790_vm12 = vcmask 72704   ;;  %vm858_vm14 = vcmp.ge.s32.totalorder %v1802_v23, 8 }
 0x160   :  { %v412_v28 = vsel %vm405_vm0, %v408_v17, %v411_v18  ;;  %v618_v29 = vsel %vm611_vm1, %v614_v19, %v617_v14  ;;  %vm1825_vm0 = vmand %vm858_vm14, %vm859_vm15 }
 0x161   :  { %v413_v37 = vsel %vm402_vm9, nan, %v412_v28  ;;  %v619_v38 = vsel %vm402_vm9, nan, %v618_v29 }
 0x163   :  { %v1394_v16 = vpop.eup %1393 }
 0x164   :  { %v1396_v24 = vpop.eup %1395  ;;  %v306_v26 = vxor.u32 2147483648, %v1394_v16 }
 0x165   :  { %v303_v27 = vxor.u32 2147483648, %v1396_v24 }
 0x166   :  { %v307_v31 = vsel %vm305_vm5, %v306_v26, %v1396_v24  ;;  %v514_v32 = vsel %vm512_vm6, %v306_v26, %v1396_v24 }
 0x167   :  { %v304_v33 = vsel %vm302_vm4, %v1394_v16, %v303_v27  ;;  %v511_v34 = vsel %vm509_vm2, %v1394_v16, %v303_v27 }
 0x168   :  { %v308_v35 = vsel %vm301_vm7, %v304_v33, %v307_v31  ;;  %v515_v36 = vsel %vm508_vm8, %v511_v34, %v514_v32 }
 0x169   :  { %v309_v39 = vsel %vm298_vm10, nan, %v308_v35  ;;  %v516_v41 = vsel %vm298_vm10, nan, %v515_v36 }
 0x16a   :  { %v625_v20 = vpack.c.bf16 %v413_v37, %v309_v39  ;;  %v729_v21 = vpack.c.bf16 %v619_v38, %v516_v41 }
 0x16c   :  { %1316 = vmatmul.mubr.msk.bf16.vlgmr.msra.gmra.mxu1 %vm631_vm11, %v625_v20  ;;  %1330 = vmatmul.mubr.msk.bf16.vlgmr.msra.gmra.mxu0 %vm631_vm11, %v729_v21  ;;  %vm856_vm11 = vcmp.lt.s32.totalorder %v1802_v23, 8 }
 0x16d   :  { %1334 = vmatpush3.bf16.msra.mxu1 %v799_v15  ;;  %1335 = vmatprep.mubr.msk.bf16.mxu1 %vm1572_vm3, %v1571_v5  ;;  %v1273_v15 = vld [vmem:[%s1888_s3] ss:$0 sm:$0xff]  ;;  %s1581_s3 = smov 96  }
 0x174   :  { %1336 = vmatmul.mubr.msk.bf16.vlgmr.msra.gmra.mxu1 %vm790_vm12, %v786_v43 }
 0x22c   :  { %v673_v48 = vpop.f32.mrf.mxu1  ;;  %v775_v49 = vpop.f32.mrf.mxu0 }
 0x22d   :  { %v723_v52 = vadd.f32 %v722_v44, %v673_v48 }
 0x22e   :  { %v1317_v50 = vpop.f32.mrf.mxu1  ;;  %v1331_v51 = vpop.f32.mrf.mxu0 }
 0x22f   :  { %v782_v57 = vadd.f32 %v775_v49, %v723_v52 }
 0x230   :  { %v676_v53 = vpop.f32.mrf.mxu1  ;;  %v778_v54 = vpop.f32.mrf.mxu0 }
 0x231   :  { %v726_v42 = vadd.f32 %v725_v46, %v676_v53 }
 0x232   :  { %v1318_v55 = vpop.f32.mrf.mxu1  ;;  %v1332_v56 = vpop.f32.mrf.mxu0 }
 0x233   :  { %v783_v63 = vadd.f32 %v778_v54, %v726_v42 }
 0x234   :  { %v835_v58 = vpop.f32.mrf.mxu1 }
 0x235   :  { %v842_v60 = vadd.f32 %v835_v58, %v782_v57 }
 0x236   :  { %v1337_v62 = vpop.f32.mrf.mxu1 }
 0x237   :  { %v1805_v0 = vadd.f32 %v1262_v59, %v842_v60 }
 0x238   :  { %v838_v1 = vpop.f32.mrf.mxu1 }
 0x239   :  { %v843_v2 = vadd.f32 %v838_v1, %v783_v63  ;;  %v861_v61 = vsel %vm856_vm11, %v1805_v0, 0.0  ;;  %v863_v10 = vsel %vm1825_vm0, %v1805_v0, 0.0 }
 0x23a   :  { %v1338_v3 = vpop.f32.mrf.mxu1  ;;  %1343 = vmatprep.mubr.msk.f32.mxu0 %vm871_vm13, %v861_v61 }
 0x23b   :  { %v1811_v4 = vadd.f32 %v1262_v59, %v843_v2 }
 0x23d   :  { %869 = vrot.lane.b32.xlu0 %v1811_v4, %s1580_s2  ;;  %v1096_v30 = vpack.c.bf16 %v1811_v4, %v1805_v0  ;;  %v862_v9 = vsel %vm856_vm11, %v1811_v4, 0.0  ;;  %v864_v11 = vsel %vm1825_vm0, %v1811_v4, 0.0 }
 0x241   :  { %867 = vrot.lane.b32.xlu0 %v1805_v0, %s1580_s2 }
 0x2af   :  { %v870_v6 = vpop.permute.xlu0 %869 }
 0x2b0   :  { %1339 = vmatprep.subr.msk.mxu0 %vm871_vm13, %v870_v6 }
 0x2b1   :  { %1340 = vmatpush3.xpose.msk.msra.mxu0 %vm871_vm13, %v870_v6 }
 0x2b3   :  { %v868_v7 = vpop.permute.xlu0 %867 }
 0x2b4   :  { %1341 = vmatprep.subr.msk.mxu0 %vm871_vm13, %v868_v7 }
 0x2b5   :  { %1342 = vmatpush3.xpose.msk.msra.mxu0 %vm871_vm13, %v868_v7 }
 0x2b6   :  { %1355 = vmatprep.subr.bf16.mxu0 %v1571_v5 }
 0x2b8   :  { %1344 = vmatmul.mubr.msk.f32.vlgmr.msra.gmra.mxu0 %vm871_vm13, %v862_v9 }
 0x2b9   :  { %1346 = vmatprep.mubr.msk.f32.mxu0 %vm871_vm13, %v863_v10 }
 0x2bc   :  { %1347 = vmatmul.mubr.msk.f32.gmra.mxu0 %vm871_vm13, %v864_v11 }
 0x2bd   :  { %1357 = vmatprep.mubr.msk.bf16.mxu0 %vm1572_vm3, %v1571_v5 }
 0x378   :  { %v1345_v13 = vpop.f32.mrf.mxu0 }
 0x379   :  { %v974_v12 = vmul.f32 0.35355338, %v1345_v13 }
 0x37a   :  { %v954_v16 = vpop.f32.mrf.mxu0 }
 0x37b   :  { %v1024_v17 = vsel %vm858_vm14, %v974_v12, -1e+30  ;;  %v973_v18 = vmul.f32 0.35355338, %v954_v16 }
 0x37c   :  { %v1348_v19 = vpop.f32.mrf.mxu0  ;;  %v1035_v14 = vadd.f32 %v1273_v15, %v1024_v17 }
 0x37d   :  { %v1280_v24 = vsel %vm858_vm14, -1e+30, %v973_v18  ;;  %v976_v26 = vmul.f32 0.35355338, %v1348_v19  ;;  %v1163_v19 = vld [vmem:[#allocation10] sm:$0xff] }
 0x37e   :  { %v964_v27 = vpop.f32.mrf.mxu0  ;;  %v1041_v5 = vsel %vm871_vm13, %v1035_v14, -inf  ;;  %v1034_v28 = vadd.f32 %v1280_v24, %v1273_v15 }
 0x37f   :  { %v1026_v29 = vsel %vm858_vm14, %v976_v26, -1e+30  ;;  %v975_v31 = vmul.f32 0.35355338, %v964_v27  ;;  %1042 = vmax.xlane.f32.xlu1 %v1041_v5 }
 0x380   :  { %v1038_v33 = vsel %vm871_vm13, %v1034_v28, -inf  ;;  %v1037_v35 = vadd.f32 %v1273_v15, %v1026_v29 }
 0x381   :  { %v1281_v32 = vsel %vm858_vm14, -1e+30, %v975_v31 }
 0x382   :  { %v1036_v34 = vadd.f32 %v1281_v32, %v1273_v15  ;;  %v1047_v37 = vsel %vm871_vm13, %v1037_v35, -inf }
 0x383   :  { %1039 = vmax.xlane.f32.xlu1 %v1038_v33 }
 0x384   :  { %v1044_v36 = vsel %vm871_vm13, %v1036_v34, -inf }
 0x385   :  { %1045 = vmax.xlane.f32.xlu0 %v1044_v36 }
 0x387   :  { %1048 = vmax.xlane.f32.xlu1 %v1047_v37  ;;  %v1276_v37 = vld [vmem:[#allocation11] ss:$0 sm:$0xff] }
 0x408   :  { %v1043_v38 = vpop.xlane.xlu1 %1042 }
 0x409   :  { %v1051_v39 = vsub.f32 %v1035_v14, %v1043_v38  ;;  %v1164_v14 = vld [vmem:[#allocation10 + $0x8] sm:$0xff] }
 0x40a   :  { %v1165_v24 = vpack.c.bf16 %v1164_v14, %v1163_v19 }
 0x40b   :  { %v1056_v41 = vmul.f32 1.442695, %v1051_v39 }
 0x40c   :  { %v1040_v20 = vpop.xlane.xlu1 %1039  ;;  %1356 = vmatpush3.bf16.msra.mxu0 %v1165_v24 }
 0x40d   :  { %1397 = vpow2.f32 %v1056_v41  ;;  %v1050_v21 = vsub.f32 %v1034_v28, %v1040_v20 }
 0x40e   :  { %v1046_v22 = vpop.xlane.xlu0 %1045 }
 0x40f   :  { %v1054_v25 = vmul.f32 1.442695, %v1050_v21  ;;  %v1052_v43 = vsub.f32 %v1036_v34, %v1046_v22 }
 0x410   :  { %v1049_v44 = vpop.xlane.xlu1 %1048 }
 0x411   :  { %1399 = vpow2.f32 %v1054_v25  ;;  %v1053_v45 = vsub.f32 %v1037_v35, %v1049_v44  ;;  %v1058_v46 = vmul.f32 1.442695, %v1052_v43 }
 0x413   :  { %v1060_v47 = vmul.f32 1.442695, %v1053_v45 }
 0x415   :  { %1401 = vpow2.f32 %v1060_v47 }
 0x416   :  { %1403 = vpow2.f32 %v1058_v46 }
 0x41a   :  { %v1398_v48 = vpop.eup %1397 }
 0x41b   :  { %v1065_v49 = vsel %vm871_vm13, %v1398_v48, 0.0 }
 0x41c   :  { %1066 = vadd.xlane.f32.xlu1 %v1065_v49 }
 0x41e   :  { %v1400_v50 = vpop.eup %1399 }
 0x41f   :  { %v1062_v51 = vsel %vm871_vm13, %v1400_v50, 0.0 }
 0x420   :  { %1063 = vadd.xlane.f32.xlu1 %v1062_v51 }
 0x422   :  { %v1402_v40 = vpop.eup %1401 }
 0x423   :  { %v1071_v52 = vsel %vm871_vm13, %v1402_v40, 0.0  ;;  %v1404_v53 = vpop.eup %1403 }
 0x424   :  { %1072 = vadd.xlane.f32.xlu1 %v1071_v52  ;;  %v1068_v54 = vsel %vm871_vm13, %v1404_v53, 0.0 }
 0x428   :  { %1069 = vadd.xlane.f32.xlu1 %v1068_v54 }
 0x439   :  { %1098 = vrot.lane.b32.xlu1 %v1096_v30, %s1581_s3 }
 0x4a5   :  { %v1067_v55 = vpop.xlane.xlu1 %1066 }
 0x4a6   :  { %1405 = vrcp.f32 %v1067_v55 }
 0x4a9   :  { %v1064_v56 = vpop.xlane.xlu1 %1063 }
 0x4aa   :  { %1407 = vrcp.f32 %v1064_v56 }
 0x4ad   :  { %v1073_v57 = vpop.xlane.xlu1 %1072 }
 0x4ae   :  { %1409 = vrcp.f32 %v1073_v57 }
 0x4b1   :  { %v1070_v42 = vpop.xlane.xlu1 %1069 }
 0x4b2   :  { %1411 = vrcp.f32 %v1070_v42 }
 0x4b3   :  { %v1406_v58 = vpop.eup %1405 }
 0x4b4   :  { %v1079_v59 = vmul.f32 %v1406_v58, %v1067_v55 }
 0x4b5   :  { %v1099_v60 = vpop.permute.xlu1 %1098 }
 0x4b6   :  { %v1083_v62 = vsub.f32 2.0, %v1079_v59  ;;  %1349 = vmatprep.subr.bf16.mxu1 %v1099_v60 }
 0x4b7   :  { %v1408_v63 = vpop.eup %1407  ;;  %1350 = vmatpush3.bf16.msra.mxu1 %v1099_v60 }
 0x4b8   :  { %v1078_v1 = vmul.f32 %v1408_v63, %v1064_v56  ;;  %v1087_v2 = vmul.f32 %v1406_v58, %v1083_v62 }
 0x4ba   :  { %v1082_v61 = vsub.f32 2.0, %v1078_v1  ;;  %v1091_v30 = vmul.f32 %v1398_v48, %v1087_v2 }
 0x4bb   :  { %v1410_v0 = vpop.eup %1409 }
 0x4bc   :  { %v1086_v3 = vmul.f32 %v1408_v63, %v1082_v61  ;;  %v1081_v4 = vmul.f32 %v1410_v0, %v1073_v57 }
 0x4be   :  { %v1090_v6 = vmul.f32 %v1400_v50, %v1086_v3  ;;  %v1085_v7 = vsub.f32 2.0, %v1081_v4 }
 0x4bf   :  { %v1412_v9 = vpop.eup %1411 }
 0x4c0   :  { %v1080_v10 = vmul.f32 %v1412_v9, %v1070_v42  ;;  %v1094_v11 = vpack.c.bf16 %v1091_v30, %v1090_v6  ;;  %v1089_v13 = vmul.f32 %v1410_v0, %v1085_v7 }
 0x4c2   :  { %v1084_v12 = vsub.f32 2.0, %v1080_v10  ;;  %1351 = vmatprep.mubr.msk.bf16.mxu1 %vm871_vm13, %v1094_v11  ;;  %v1093_v16 = vmul.f32 %v1402_v40, %v1089_v13 }
 0x4c4   :  { %v1088_v15 = vmul.f32 %v1412_v9, %v1084_v12 }
 0x4c6   :  { %v1092_v17 = vmul.f32 %v1404_v53, %v1088_v15 }
 0x4c8   :  { %v1095_v18 = vpack.c.bf16 %v1093_v16, %v1092_v17 }
 0x4ca   :  { %1352 = vmatmul.mubr.msk.bf16.vlgmr.msra.gmra.mxu1 %vm871_vm13, %v1095_v18 }
 0x58a   :  { %v1353_v26 = vpop.f32.mrf.mxu1 }
 0x58b   :  { %v1158_v31 = vsel %vm1825_vm0, %v1353_v26, 0.0 }
 0x58c   :  { %v1141_v27 = vpop.f32.mrf.mxu1 }
 0x58d   :  { %v1156_v28 = vsel %vm856_vm11, %v1141_v27, 0.0 }
 0x58e   :  { %v1354_v5 = vpop.f32.mrf.mxu1  ;;  %v1160_v34 = vadd.f32 %v1158_v31, %v1156_v28 }
 0x58f   :  { %v1159_v32 = vsel %vm1825_vm0, %v1354_v5, 0.0 }
 0x590   :  { %v1144_v29 = vpop.f32.mrf.mxu1 }
 0x591   :  { %v1157_v33 = vsel %vm856_vm11, %v1144_v29, 0.0 }
 0x592   :  { %v1161_v35 = vadd.f32 %v1159_v32, %v1157_v33 }
 0x594   :  { %v1162_v36 = vpack.c.bf16 %v1161_v35, %v1160_v34 }
 0x596   :  { %1358 = vmatmul.mubr.msk.bf16.vlgmr.msra.gmra.mxu0 %vm871_vm13, %v1162_v36 }
 0x656   :  { %v1210_v38 = vpop.f32.mrf.mxu0 }
 0x657   :  { %v1211_v39 = vadd.f32 %v1276_v37, %v1210_v38 }
 0x658   :  { %v1359_v41 = vpop.f32.mrf.mxu0 }
 0x659   :  { %1217 = vst.msk [vmem:[#allocation13] sm:$0xff] %vm871_vm13, %v1211_v39 }
 0x65a   :  { %v1213_v20 = vpop.f32.mrf.mxu0 }
 0x65b   :  { %v1214_v21 = vadd.f32 %v1276_v37, %v1213_v20 }
 0x65c   :  { %v1360_v8 = vpop.f32.mrf.mxu0 }
 0x65d   :  { %1218 = vst.msk [vmem:[#allocation13 + $0x8] sm:$0xff] %vm871_vm13, %v1214_v21 }
 0x65e   :  { %1544 = shalt.err (!%p1541_p6)
}
 0x65f   :  { %1230 = dma.vmem_to_hbm [thread:$0]  %s1225_s15, 256, %s1897_s12, [#allocation4], %s1567_s9, %s1567_s9, %s1568_s21  }
 0x660   :  { %1561 = dma.done.wait [#allocation4], 256  }
 0x661   :  { %1562 = vsyncadd [#allocation4], 4294967040 }
 0x662   :  { %1234 = vsyncpa [#allocation3], 1 }
 0x663   :  { %1235 = vsyncpa [#allocation6], 1 }
 0x664   :  { %1236 = vsyncpa [#allocation9], 1 }
 0x665   :  { %1237 = vsyncpa [#allocation12], 1 }
 0x666   :  { %1238 = vsyncpa [#allocation4], 1 }

</bundles_post_ra>
